<compile_context>
chip_gen: v7x
topology: tpu7x:2x2x1
jax: 0.10.0
libtpu: 0.0.40
codegen_flags: <defaults>
</compile_context>

<pallas_src>
import jax
import jax.numpy as jnp
from jax.experimental import pallas as pl
from jax.experimental.pallas import tpu as pltpu

_LANE = 128             # lanes per vreg (fast axis)
_MAX_BLOCK_ROWS = 2048  # (2048, 128) f32 = 1 MiB per pipeline buffer
_NUM_SLICES = 2         # leading "parallel" axis: 2 TCs on v7x, free elsewhere


def _make_sum_kernel(tiles_per_slice: int, num_tiles: int, num_slices: int):
    """Accumulate each (block_rows, 128) tile into the resident (8, 128)
    VMEM output block with elementwise VPU adds only."""
    needs_mask = (tiles_per_slice * num_slices) != num_tiles

    def kernel(x_ref, o_ref):
        j = pl.program_id(1)

        @pl.when(j == 0)
        def _init():
            o_ref[...] = jnp.zeros_like(o_ref)

        def _accumulate():
            x = x_ref[...].astype(jnp.float32)  # in-kernel upcast (VPU, free)
            # Fold the tile into one vreg-shaped partial sum: pure VPU adds,
            # no cross-lane/sublane work on the per-step critical path.
            o_ref[...] += x.reshape(-1, 8, _LANE).sum(axis=0)

        if needs_mask:
            # Ghost cells only exist when num_tiles is odd; their index_map is
            # clamped onto the last real tile, so just skip their contribution.
            linear = pl.program_id(0) * tiles_per_slice + j
            pl.when(linear < num_tiles)(_accumulate)
        else:
            _accumulate()

    return kernel


def vdn_mixer_forward(losses: jax.Array) -> jax.Array:
    """Equivalent of VDNMixer.forward: torch.sum(losses) -> scalar."""
    out_dtype = losses.dtype
    flat = losses.reshape(-1)  # native dtype: no wrapper upcast / extra HBM copy
    n = flat.shape[0]
    if n == 0:
        return jnp.zeros((), out_dtype)

    itemsize = jnp.dtype(losses.dtype).itemsize
    # Sublane-packing-aligned row multiple: 8 for 32-bit, 16 for bf16, 32 for int8.
    sub_mult = max(8, 8 * (4 // max(itemsize, 1)))
    rows = pl.cdiv(n, _LANE)
    rows_aligned = ((rows + sub_mult - 1) // sub_mult) * sub_mult
    block_rows = min(_MAX_BLOCK_ROWS, rows_aligned)  # small inputs -> single block
    tile_elems = block_rows * _LANE

    num_full_tiles = n // tile_elems
    tail_start = num_full_tiles * tile_elems
    tail_sum = None

    if num_full_tiles == 0:
        # Input smaller than one tile: pad up to a single tile (pad is tiny,
        # < sub_mult*128 + 128 elements; zero padding is sum-neutral).
        main = jnp.pad(flat, (0, tile_elems - n))
        num_tiles = 1
    else:
        # Tile-aligned prefix goes through the kernel; the (< one tile) ragged
        # tail is reduced by a tiny XLA sum instead of a whole-tensor pad copy.
        main = flat if tail_start == n else flat[:tail_start]
        num_tiles = num_full_tiles
        if tail_start != n:
            tail_sum = jnp.sum(flat[tail_start:].astype(jnp.float32))

    x2d = main.reshape(-1, _LANE)  # free bitcast: length is lane-aligned here

    num_slices = _NUM_SLICES if num_tiles >= _NUM_SLICES else 1
    tiles_per_slice = pl.cdiv(num_tiles, num_slices)
    last_tile = num_tiles - 1

    def x_index_map(s, j):
        # Clamp trailing ghost cells (odd tile counts) onto the last real tile;
        # the kernel masks out their contribution.
        return (jnp.minimum(s * tiles_per_slice + j, last_tile), 0)

    kernel = _make_sum_kernel(tiles_per_slice, num_tiles, num_slices)

    partials = pl.pallas_call(
        kernel,
        out_shape=jax.ShapeDtypeStruct((num_slices * 8, _LANE), jnp.float32),
        grid_spec=pltpu.PrefetchScalarGridSpec(
            num_scalar_prefetch=0,
            grid=(num_slices, tiles_per_slice),
            in_specs=[pl.BlockSpec((block_rows, _LANE), x_index_map)],
            # Per-slice (8, 128) partial-sum block: lane-dense, stays resident
            # in VMEM across the inner "arbitrary" axis (the accumulator).
            out_specs=pl.BlockSpec((8, _LANE), lambda s, j: (s, 0)),
        ),
        compiler_params=pltpu.CompilerParams(
            dimension_semantics=("parallel", "arbitrary"),
        ),
        cost_estimate=pl.CostEstimate(
            flops=n,
            transcendentals=0,
            bytes_accessed=n * itemsize + num_slices * 8 * _LANE * 4,
        ),
    )(x2d)

    # Single tiny cross-lane reduce (<= 2048 f32) done once, outside the kernel.
    total = jnp.sum(partials)
    if tail_sum is not None:
        total = total + tail_sum
    return total.astype(out_dtype)


if __name__ == "__main__":
    key = jax.random.PRNGKey(0)
    k_small, k_big = jax.random.split(key)

    # Small example "losses" tensor; VDNMixer accepts any shape.
    losses = jax.random.normal(k_small, (2, 4, 16, 16), dtype=jnp.float32)
    result = jax.block_until_ready(vdn_mixer_forward(losses))
    expected = jnp.sum(losses)
    assert jnp.allclose(result, expected, rtol=1e-5, atol=1e-4), (result, expected)

    # Multi-tile path: odd tile count (ghost-cell masking), 2-way parallel
    # slice split, and a ragged tail (last dim 130 is not tile-aligned).
    # Positive values keep the f32 comparison tight.
    big = jax.random.uniform(k_big, (3, 1024, 130), dtype=jnp.float32)
    r2 = jax.block_until_ready(vdn_mixer_forward(big))
    e2 = jnp.sum(big)
    assert jnp.allclose(r2, e2, rtol=1e-4, atol=1e-2), (r2, e2)

    print("KERNEL_OK")
</pallas_src>

<mosaic_0001>
module attributes {stable_mosaic.version = 11 : i64} {
  func.func @kernel(%arg0: i32, %arg1: i32, %arg2: memref<16x128xf32, #tpu.memory_space<vmem>>, %arg3: memref<8x128xf32, #tpu.memory_space<vmem>>) attributes {dimension_semantics = [#tpu.dimension_semantics<parallel>, #tpu.dimension_semantics<arbitrary>], iteration_bounds = array<i64: 1, 1>, scalar_prefetch = 0 : i64, scratch_operands = 0 : i64, tpu.core_type = #tpu.core_type<tc>, window_params = [{transform_indices = @transform_0, window_bounds = array<i64: 16, 128>}, {transform_indices = @transform_1, window_bounds = array<i64: 8, 128>}]} {
    %c0_i32 = arith.constant 0 : i32
    %0 = arith.cmpi eq, %arg1, %c0_i32 : i32
    %1 = arith.extui %0 : i1 to i32
    %c0_i32_0 = arith.constant 0 : i32
    %2 = arith.cmpi ne, %1, %c0_i32_0 : i32
    scf.if %2 {
      %cst_6 = arith.constant 0.000000e+00 : f32
      %9 = vector.broadcast %cst_6 : f32 to vector<8x128xf32>
      %c0_7 = arith.constant 0 : index
      %c0_8 = arith.constant 0 : index
      %10 = vector.load %arg3[%c0_7, %c0_8] : memref<8x128xf32, #tpu.memory_space<vmem>>, vector<8x128xf32>
      tpu.vector_store %arg3[%c0_7, %c0_8], %9 {strides = array<i32>} : memref<8x128xf32, #tpu.memory_space<vmem>>, vector<8x128xf32>,
    } else {
    }
    %c0 = arith.constant 0 : index
    %c0_1 = arith.constant 0 : index
    %3 = vector.load %arg2[%c0, %c0_1] : memref<16x128xf32, #tpu.memory_space<vmem>>, vector<16x128xf32>
    %c0_2 = arith.constant 0 : index
    %c0_3 = arith.constant 0 : index
    %4 = vector.load %arg3[%c0_2, %c0_3] : memref<8x128xf32, #tpu.memory_space<vmem>>, vector<8x128xf32>
    %5 = vector.shape_cast %3 : vector<16x128xf32> to vector<2x8x128xf32>
    %cst = arith.constant dense<0.000000e+00> : vector<8x128xf32>
    %6 = vector.multi_reduction <add>, %5, %cst [0] : vector<2x8x128xf32> to vector<8x128xf32>
    %7 = arith.addf %4, %6 : vector<8x128xf32>
    %c0_4 = arith.constant 0 : index
    %c0_5 = arith.constant 0 : index
    %8 = vector.load %arg3[%c0_4, %c0_5] : memref<8x128xf32, #tpu.memory_space<vmem>>, vector<8x128xf32>
    tpu.vector_store %arg3[%c0_4, %c0_5], %7 {strides = array<i32>} : memref<8x128xf32, #tpu.memory_space<vmem>>, vector<8x128xf32>,
    return
  }
  func.func @transform_0(%arg0: i32, %arg1: i32) -> (i32, i32) {
    %c1_i32 = arith.constant 1 : i32
    %0 = arith.muli %arg0, %c1_i32 : i32
    %1 = arith.addi %0, %arg1 : i32
    %c0_i32 = arith.constant 0 : i32
    %2 = arith.minsi %1, %c0_i32 : i32
    %c0_i32_0 = arith.constant 0 : i32
    %c0_i32_1 = arith.constant 0 : i32
    return %2, %c0_i32_0 : i32, i32
  }
  func.func @transform_1(%arg0: i32, %arg1: i32) -> (i32, i32) {
    %c0_i32 = arith.constant 0 : i32
    %c0_i32_0 = arith.constant 0 : i32
    return %arg0, %c0_i32 : i32, i32
  }
}

</mosaic_0001>

<bundles_post_ra>
// kernel: tpu_custom_call.1
= control target key start
LH: loop header
LB: loop body
LE: loop exit
PB: predicated region body
PF: predicated region fallthrough
CT: control target
= control target key end

     0   :  { %6 = vsyncpa [#allocation3], 0  ;;  %s152_s0 = inlined_call_operand.hbm [shape: f32[16,128], index: 0, kind: input, shape index: {}]   ;;  %s153_s1 = inlined_call_operand.hbm [shape: f32[8,128], index: 1, kind: output, shape index: {}]  }
   0x1   :  { %7 = vsyncpa [#allocation4], 0  ;;  %s114_s6 = smov [#allocation2]   ;;  %s66_s10 = scalar_lea.hbm %s152_s0, 256 }
   0x2   :  { %s19_s7 = sshll.u32 %s114_s6, 4  ;;  %p67_p0 = scmp.ne.s32.totalorder %s152_s0, %s66_s10  ;;  %s20_s7 = int_to_ptr.vmem [resolvable:$true] %s19_s7 }
   0x3   :  { %p70_p1 = scmp.lt.u32.totalorder %s66_s10, %s152_s0 }
   0x5   :  { %p72_p2 = pnand %p70_p1, %p67_p0 }
   0x7   :  { %75 = shalt.err (!%p72_p2)
}
   0x8   :  { %s76_s15 = scalar_lea.vmem %s20_s7, 256  ;;  %p81_p4 = scmp.lt.s32.totalorder %s20_s7, %s20_s7 }
   0x9   :  { %p77_p3 = scmp.ne.s32.totalorder %s20_s7, %s76_s15  ;;  %p82_p5 = scmp.lt.s32.totalorder %s76_s15, %s76_s15 }
   0xb   :  { %p83_p6 = por %p82_p5, %p81_p4 }
   0xd   :  { %p84_p7 = pnand %p83_p6, %p77_p3 }
   0xf   :  { %87 = shalt.err (!%p84_p7)
}
  0x10   :  { %s115_s16 = smov 128   ;;  %s116_s17 = smov 8  }
  0x11   :  { %25 = dma.hbm_to_vmem [thread:$0]  %s152_s0, 256, %s20_s7, [#allocation3], %s115_s16, %s115_s16, %s116_s17  }
  0x12   :  { %110 = dma.done.wait [#allocation3], 256  }
  0x13   :  { %111 = vsyncadd [#allocation3], 4294967040  ;;  %v38_v0 = vld [vmem:[#allocation2] sm:$0xff]  ;;  %v39_v1 = vld [vmem:[#allocation2 + $0x8] sm:$0xff]  ;;  %s117_s20 = smov [#allocation5]  }
  0x14   :  { %s50_s21 = sshll.u32 %s117_s20, 4  ;;  %v41_v2 = vadd.f32 %v39_v1, %v38_v0  ;;  %s51_s21 = int_to_ptr.vmem [resolvable:$true] %s50_s21 }
  0x15   :  { %s88_s22 = scalar_lea.vmem %s51_s21, 128  ;;  %p93_p9 = scmp.lt.s32.totalorder %s51_s21, %s51_s21 }
  0x16   :  { %43 = vst [vmem:[#allocation5] sm:$0xff] %v41_v2  ;;  %p89_p8 = scmp.ne.s32.totalorder %s51_s21, %s88_s22  ;;  %p94_p10 = scmp.lt.s32.totalorder %s88_s22, %s88_s22 }
  0x18   :  { %p95_p11 = por %p94_p10, %p93_p9 }
  0x1a   :  { %p96_p12 = pnand %p95_p11, %p89_p8 }
  0x1c   :  { %99 = shalt.err (!%p96_p12)
}
  0x1d   :  { %s100_s0 = scalar_lea.hbm %s153_s1, 128 }
  0x1e   :  { %p101_p13 = scmp.ne.s32.totalorder %s153_s1, %s100_s0  ;;  %p104_p0 = scmp.lt.u32.totalorder %s100_s0, %s153_s1 }
  0x20   :  { %p106_p1 = pnand %p104_p0, %p101_p13 }
  0x22   :  { %109 = shalt.err (!%p106_p1)
}
  0x23   :  { %53 = dma.vmem_to_hbm [thread:$0]  %s51_s21, 128, %s153_s1, [#allocation4]  }
  0x24   :  { %112 = dma.done.wait [#allocation4], 128  }
  0x25   :  { %113 = vsyncadd [#allocation4], 4294967168 }
  0x26   :  { %57 = vsyncpa [#allocation3], 1 }
  0x27   :  { %58 = vsyncpa [#allocation4], 1 }

</bundles_post_ra>
